<compile_context>
chip_gen: v5e
topology: v5e:2x2
jax: 0.10.0
libtpu: 0.0.40
codegen_flags: <defaults>
</compile_context>

<pallas_src>
import jax
import jax.numpy as jnp
from jax.experimental import pallas as pl
from jax.experimental.pallas import tpu as pltpu


def _scale_rows_kernel(p_ref, y_ref, o_ref):
    # p_ref: (n_comp,) f32 scales in SMEM; y_ref / o_ref: (br, 128) f32 VMEM.
    # Scalar-from-SMEM times dense vector tile -> pure VPU, single f32 store
    # stream (friendly to v5e's single vst slot).
    c = pl.program_id(0)  # which state component (0 or 1)
    o_ref[...] = p_ref[c] * y_ref[...]


def pad_state(y, lane=128):
    """Pad the state ONCE at solver init so every RHS call is pad/slice free."""
    n = y.shape[-1]
    pad = (-n) % lane
    if pad:
        y = jnp.pad(y, ((0, 0), (0, pad)))
    return y, n  # caller slices [..., :n] once at the very end


def func_forward(t, y, params, *, block_rows=4096):
    """Pallas equivalent of Func.forward(t, y).

    t          : scalar (unused by the forward pass, kept for signature parity)
    y          : (2, N) float32 array with N % 128 == 0 (pad once via pad_state)
    params     : (2,) float32 array == [param1, param2]  (build ONCE, reuse)
    block_rows : max sublane rows (of 128 lanes) per tile. 4096 rows -> 2 MiB
                 per f32 block; double-buffered in+out ~8 MiB, well under the
                 scoped-VMEM budget on v5e/v6e/v7x.
    returns    : (2, N) float32 array == stack([param1*y[0], param2*y[1]])
    """
    del t  # forward() never uses t
    y = jnp.asarray(y, jnp.float32)
    params = jnp.asarray(params, jnp.float32)
    n_comp, n = y.shape

    # Correctness guards (cheap, trace-time only).
    if params.shape != (n_comp,):
        raise ValueError(f"params shape {params.shape} != ({n_comp},)")
    if n % 128 != 0:
        raise ValueError(
            "state length must be a multiple of 128; pad once at init with "
            "pad_state() instead of paying a per-call HBM pad/slice pass")

    # Zero-copy lane-dense view: each component row becomes an (r, 128) slab,
    # so every vreg / VMEM tile is fully populated and all stores are
    # unmasked full-width vst.
    r = n // 128
    y3 = y.reshape(n_comp, r, 128)

    # Tile rows: either the whole slab, or a sublane-aligned (multiple of 8)
    # chunk, satisfying the (8, 128) block constraint.
    br = min(block_rows, r)
    if br != r:
        br = max(8, (br // 8) * 8)
    grid = (n_comp, pl.cdiv(r, br))

    out = pl.pallas_call(
        _scale_rows_kernel,
        out_shape=jax.ShapeDtypeStruct((n_comp, r, 128), jnp.float32),
        grid=grid,
        in_specs=[
            # (2,) parameter vector lives in SMEM: no VMEM tile, no DMA padding.
            pl.BlockSpec(memory_space=pltpu.MemorySpace.SMEM),
            # Squeeze the component axis; tile the (r, 128) slab over the grid.
            pl.BlockSpec((None, br, 128), lambda c, j: (c, j, 0)),
        ],
        out_specs=pl.BlockSpec((None, br, 128), lambda c, j: (c, j, 0)),
        compiler_params=pltpu.CompilerParams(
            # Both grid axes are independent -> shard across TCs on v7x;
            # measured effect ~0 on single-TC v5e/v6e, so harmless there.
            dimension_semantics=("parallel", "parallel"),
            # Explicit budget: covers the ~8 MiB double-buffered footprint on
            # v5e (16 MiB default scoped) and stays <= every chip's physical.
            vmem_limit_bytes=32 * 1024 * 1024,
        ),
    )(params, y3)

    return out.reshape(n_comp, n)


if __name__ == "__main__":
    key = jax.random.PRNGKey(0)
    N = 2048  # per-component length; multiple of 128 -> fully dense slabs
    y = jax.random.normal(key, (2, N), dtype=jnp.float32)
    t = jnp.float32(0.0)

    # Deterministic parameters matching the module's __init__.
    param1 = 5.0
    param2 = -5.0
    # Hoisted out of the per-step path: built once, reused for every RHS call.
    params = jnp.array([param1, param2], dtype=jnp.float32)

    # Reference (plain JAX mirror of the PyTorch forward).
    ref = jnp.stack([param1 * y[0], param2 * y[1]])

    # 1) Default (large-block) path: grid (2, 1) at this small size.
    f = jax.block_until_ready(func_forward(t, y, params))
    assert f.shape == (2, N)
    assert jnp.allclose(f, ref, atol=1e-6), "mismatch vs reference (default)"

    # 2) Small block_rows to exercise the tiled / pipelined multi-block path.
    f_tiled = jax.block_until_ready(func_forward(t, y, params, block_rows=8))
    assert jnp.allclose(f_tiled, ref, atol=1e-6), "mismatch vs reference (tiled)"

    print("KERNEL_OK")
</pallas_src>

<mosaic_0001>
module attributes {stable_mosaic.version = 11 : i64} {
  func.func @_scale_rows_kernel(%arg0: i32, %arg1: i32, %arg2: memref<2xf32, #tpu.memory_space<smem>>, %arg3: memref<1x16x128xf32, #tpu.memory_space<vmem>>, %arg4: memref<1x16x128xf32, #tpu.memory_space<vmem>>) attributes {dimension_semantics = [#tpu.dimension_semantics<parallel>, #tpu.dimension_semantics<parallel>], iteration_bounds = array<i64: 2, 1>, scalar_prefetch = 0 : i64, scratch_operands = 0 : i64, tpu.core_type = #tpu.core_type<tc>, window_params = [{transform_indices = @transform_0, window_bounds = array<i64: 2>}, {transform_indices = @transform_1, window_bounds = array<i64: 1, 16, 128>}, {transform_indices = @transform_2, window_bounds = array<i64: 1, 16, 128>}]} {
    %0 = arith.index_cast %arg0 : i32 to index
    %1 = memref.load %arg2[%0] : memref<2xf32, #tpu.memory_space<smem>>
    %c0 = arith.constant 0 : index
    %c0_0 = arith.constant 0 : index
    %c0_1 = arith.constant 0 : index
    %2 = vector.load %arg3[%c0, %c0_0, %c0_1] : memref<1x16x128xf32, #tpu.memory_space<vmem>>, vector<1x16x128xf32>
    %3 = vector.shape_cast %2 : vector<1x16x128xf32> to vector<16x128xf32>
    %4 = vector.broadcast %1 : f32 to vector<16x128xf32>
    %5 = arith.mulf %4, %3 : vector<16x128xf32>
    %c0_2 = arith.constant 0 : index
    %c0_3 = arith.constant 0 : index
    %c0_4 = arith.constant 0 : index
    %6 = vector.load %arg4[%c0_2, %c0_3, %c0_4] : memref<1x16x128xf32, #tpu.memory_space<vmem>>, vector<1x16x128xf32>
    %7 = vector.shape_cast %6 : vector<1x16x128xf32> to vector<16x128xf32>
    %8 = vector.shape_cast %5 : vector<16x128xf32> to vector<1x16x128xf32>
    tpu.vector_store %arg4[%c0_2, %c0_3, %c0_4], %8 {strides = array<i32>} : memref<1x16x128xf32, #tpu.memory_space<vmem>>, vector<1x16x128xf32>,
    return
  }
  func.func @transform_0(%arg0: i32, %arg1: i32) -> i32 {
    %c0_i32 = arith.constant 0 : i32
    %c0_i32_0 = arith.constant 0 : i32
    return %c0_i32 : i32
  }
  func.func @transform_1(%arg0: i32, %arg1: i32) -> (i32, i32, i32) {
    %c0_i32 = arith.constant 0 : i32
    %c0_i32_0 = arith.constant 0 : i32
    return %arg0, %arg1, %c0_i32 : i32, i32, i32
  }
  func.func @transform_2(%arg0: i32, %arg1: i32) -> (i32, i32, i32) {
    %c0_i32 = arith.constant 0 : i32
    %c0_i32_0 = arith.constant 0 : i32
    return %arg0, %arg1, %c0_i32 : i32, i32, i32
  }
}

</mosaic_0001>

<bundles_post_ra>
// kernel: tpu_custom_call.1
= control target key start
LH: loop header
LB: loop body
LE: loop exit
PB: predicated region body
PF: predicated region fallthrough
CT: control target
= control target key end

     0   :  { %7 = vsyncpa [#allocation5], 0  ;;  %s724_s0 = inlined_call_operand.hbm [shape: f32[2], index: 0, kind: input, shape index: {}]   ;;  %s725_s1 = inlined_call_operand.hbm [shape: f32[2,16,128], index: 1, kind: input, shape index: {}]   ;;  %s726_s2 = inlined_call_operand.hbm [shape: f32[2,16,128], index: 2, kind: output, shape index: {}]  }
   0x1   :  { %8 = vsyncpa [#allocation3], 0 }
   0x2   :  { %10 = vsyncpa [#allocation3 + $0x1], 0 }
   0x3   :  { %11 = vsyncpa [#allocation4], 0 }
   0x4   :  { %13 = vsyncpa [#allocation4 + $0x1], 0  ;;  %s572_s9 = smov 0   ;;  %s574_s10 = smov 0  }
   0x5   :  { %s576_s11 = smov 0   ;;  %s578_s12 = smov 0  }
   0x6   :  { %s580_s13 = smov 0   ;;  %s582_s14 = smov 0  }
   0x7 LB: > { %s323_s15 = sadd.s32 4294967295, %s550_s14   ;;  %s324_s16 = sadd.s32 4294967294, %s550_s14   ;;  %s550_s14 = sphi %s582_s14, %s19_s14   ;;  %s546_s13 = sphi %s580_s13, %s738_s13   ;;  %s542_s12 = sphi %s578_s12, %s737_s12   ;;  %s538_s11 = sphi %s576_s11, %s736_s11   ;;  %s534_s10 = sphi %s574_s10, %s735_s10   ;;  %s530_s9 = sphi %s572_s9, %s734_s9  }
   0x8   : > { %s61_s17 = sadd.s32 1, %s538_s11  ;;  %p68_p0 = scmp.ne.s32.totalorder %s538_s11, %s534_s10 }
   0x9   : > { %p69_p1 = scmp.eq.s32.totalorder %s550_s14, 0  ;;  %p74_p2 = scmp.ne.s32.totalorder %s534_s10, %s530_s9 }
   0xa   : > { %p610_p3 = scmp.eq.s32.totalorder %s323_s15, 0  ;;  %p100_p4 = scmp.eq.s32.totalorder %s323_s15, 1 }
   0xb   : > { %p614_p5 = por %p69_p1, %p68_p0  ;;  %p106_p6 = scmp.eq.s32.totalorder %s324_s16, 1 }
   0xc   : > { %p620_p7 = por %p610_p3, %p74_p2  ;;  %p624_p8 = por %p100_p4, %p68_p0 }
   0xd   : > { %p628_p9 = por %p106_p6, %p74_p2  ;;  %p325_p10 = scmp.ge.s32.totalorder %s550_s14, 1 }
   0xe   : > { %p113_p11 = scmp.lt.s32.totalorder %s550_s14, 3  ;;  %s125_s25 = sshll.u32 %s724_s0, 4  ;;  %s126_s25 = int_to_ptr.hbm [resolvable:$true] %s125_s25 }
   0xf   : > { %p327_p13 = scmp.ge.s32.totalorder %s550_s14, 2  ;;  %p363_p0 = scmp.lt.s32.totalorder %s550_s14, 2 }
  0x10   : > { %p637_p12 = pnand %p325_p10, %p113_p11  ;;  %s31_s28 = sadd.s32 1, %s546_s13 }
  0x11   : > { %p647_p2 = pnand %p363_p0, %p614_p5  ;;  %p33_p6 = scmp.ge.s32.totalorder %s31_s28, 2 }
  0x12   : > { %p350_p1 = pneg %p637_p12  ;;  %s136_s29 = sand.u32 1, %s538_s11  }
  0x13   : > { %s552_s30 = smov [#allocation2]   ;;  %s740_s28 = smov (%p33_p6, %s31_s28), 0 }
  0x14   : > { %p351_p4 = pnand %p350_p1, %p610_p3  ;;  %s328_s3 = sshll.u32 %s136_s29, 4 }
  0x15   : > { %s56_s4 = ssub.s32 %s546_s13, %s740_s28  ;;  %s340_s5 = sshll.u32 %s546_s13, 4 }
  0x16   : > { %353 = dma.hbm_to_smem (!%p351_p4), %s126_s25, 16, %s552_s30, [#allocation5]  }
  0x17   : > { %p59_p10 = scmp.eq.s32.totalorder %s56_s4, 0  ;;  %s147_s8 = scalar_lea.hbm %s725_s1, %s340_s5 }
  0x18   : > { %s140_s15 = scalar_lea.vmem [#allocation6], %s328_s3  ;;  %s148_s23 = sshll.u32 %s147_s8, 4  ;;  %s149_s23 = int_to_ptr.hbm [resolvable:$true] %s148_s23 }
  0x19   : > { %s150_s16 = sshll.u32 %s140_s15, 4  ;;  %s137_s24 = scalar_lea.sflag [#allocation3], %s136_s29  ;;  %s151_s16 = int_to_ptr.vmem [resolvable:$true] %s150_s16 }
  0x1a   : > { %s666_s19 = scalar_select %p59_p10, %s538_s11, %s61_s17  }
  0x1b   : > { %s553_s25 = smov 128   ;;  %s554_s30 = smov 8  }
  0x1c   : > { %357 = dma.hbm_to_vmem [thread:$0]  (!%p647_p2), %s149_s23, 256, %s151_s16, %s137_s24, %s553_s25, %s553_s25, %s554_s30  }
  0x1d   : > { %162 = sbr.rel (%p637_p12) target bundleno = 57 (0x39), region = 28 }
  0x22   : > { %517 = dma.done.wait (%p610_p3), [#allocation5], 16  }
  0x23   : > { %519 = vsyncadd (%p610_p3), [#allocation5], 4294967280  ;;  %s677_s17 = sand.u32 1, %s534_s10  }
  0x24   : > { %s333_s29 = sshll.u32 %s677_s17, 4  ;;  %s170_s3 = scalar_lea.sflag [#allocation3], %s677_s17 }
  0x25   : > { %s173_s4 = scalar_lea.vmem [#allocation6], %s333_s29 }
  0x26   : > { %521 = dma.done.wait (%p620_p7), %s170_s3, 256  }
  0x27   : > { %523 = vsyncadd (%p620_p7), %s170_s3, 4294967040 }
  0x28   : > { %179 = sfence }
  0x29   : > { %s198_s18 = sld [smem:[#allocation2 + %s542_s12]]  ;;  %s341_s26 = sshll.u32 %s542_s12, 4  ;;  %v199_v0 = vld [vmem:[%s173_s4] sm:$0xff]  ;;  %v200_v1 = vld [vmem:[%s173_s4 + $0x8] sm:$0xff] }
  0x2a   : > { %s220_s6 = scalar_lea.hbm %s726_s2, %s341_s26  ;;  %s195_s7 = scalar_lea.vmem [#allocation7], %s333_s29 }
  0x2b   : > { %s221_s8 = sshll.u32 %s195_s7, 4  ;;  %s223_s15 = sshll.u32 %s220_s6, 4  ;;  %s222_s8 = int_to_ptr.vmem [resolvable:$true] %s221_s8  ;;  %s224_s15 = int_to_ptr.hbm [resolvable:$true] %s223_s15 }
  0x2c   : > { %s207_s20 = scalar_lea.sflag [#allocation4], %s677_s17  ;;  %s478_s16 = sshra.s32 %s224_s15, 4  ;;  %s479_s16 = int_to_ptr.hbm [resolvable:$true] %s478_s16 }
  0x2d   : > { %s480_s12 = scalar_lea.hbm %s479_s16, 16  ;;  %s484_s25 = scalar_lea.hbm %s726_s2, 32 }
  0x2e   : > { %p481_p3 = scmp.ne.s32.totalorder %s479_s16, %s480_s12  ;;  %p485_p11 = scmp.lt.s32.totalorder %s479_s16, %s726_s2 }
  0x2f   : > { %v201_v2 = vstv %s198_s18  ;;  %p486_p12 = scmp.lt.s32.totalorder %s484_s25, %s480_s12 }
  0x30   : > { %v202_v3 = vmul.f32 %v201_v2, %v199_v0  ;;  %v203_v4 = vmul.f32 %v201_v2, %v200_v1  ;;  %p482_p5 = pnand %p481_p3, %p624_p8 }
  0x31   : > { %p487_p0 = por %p486_p12, %p485_p11 }
  0x32   : > { %204 = vst [vmem:[%s195_s7] sm:$0xff] %v202_v3  ;;  %p483_p7 = pneg %p482_p5 }
  0x33   : > { %205 = vst [vmem:[%s195_s7 + $0x8] sm:$0xff] %v203_v4 }
  0x34   : > { %p488_p1 = pnand %p487_p0, %p483_p7 }
  0x36   : > { %491 = shalt.err (!%p488_p1)
}
  0x37   : > { %s555_s17 = smov 128   ;;  %s556_s3 = smov 8  }
  0x38   : > { %348 = dma.vmem_to_hbm [thread:$0]  (%p624_p8), %s222_s8, 256, %s224_s15, %s207_s20, %s555_s17, %s555_s17, %s556_s3  }
  0x39 PF: > { %s238_s4 = sand.u32 1, %s530_s9   ;;  %p359_p2 = pnand %p327_p13, %p628_p9 }
  0x3a   : > { %s239_s18 = scalar_lea.sflag [#allocation4], %s238_s4 }
  0x3b   : > { %p360_p4 = pneg %p359_p2 }
  0x3d   : > { %525 = dma.done.wait (%p360_p4), %s239_s18, 256  }
  0x3e   : > { %527 = vsyncadd (%p360_p4), %s239_s18, 4294967040  ;;  %s19_s14 = sadd.s32 1, %s550_s14   ;;  %s734_s9 = smov %s534_s10 }
  0x3f   : > { %p16_p6 = scmp.ge.s32.totalorder %s19_s14, 4   ;;  %s735_s10 = smov %s538_s11 }
  0x40   : > { %s736_s11 = smov %s666_s19  ;;  %s737_s12 = smov %s546_s13 }
  0x41   : > { %s738_s13 = smov %s740_s28  ;;  %18 = sbr.rel (!%p16_p6) target bundleno = 7 (0x7), region = 78 }
  0x46   :  { %245 = vsyncpa [#allocation3], 1 }
  0x47   :  { %247 = vsyncpa [#allocation3 + $0x1], 1 }
  0x48   :  { %248 = vsyncpa [#allocation4], 1 }
  0x49   :  { %250 = vsyncpa [#allocation4 + $0x1], 1 }
  0x4a   :  { %251 = vsyncpa [#allocation5], 1 }
  0x4b   :  { %253 = vsyncpa [#allocation5 + $0x1], 1 }

</bundles_post_ra>
